<compile_context>
chip_gen: v6e
topology: v6e:2x2x1
jax: 0.10.0
libtpu: 0.0.40
codegen_flags: <defaults>
</compile_context>

<pallas_src>
import functools

import numpy as np
import jax
import jax.numpy as jnp
from jax import lax
from jax.experimental import pallas as pl
from jax.experimental.pallas import tpu as pltpu

EPSILON = float(np.finfo(np.float32).tiny)


# ---------------------------------------------------------------------------
# Kernel
# ---------------------------------------------------------------------------

def _row_softmax_from_exp(e, approx_recip):
    # e: non-negative exponentials; normalize along the lane axis.
    denom = jnp.sum(e, axis=-1, keepdims=True)
    return e * pl.reciprocal(denom, approx=approx_recip)


def _subset_kernel(scores_ref, gumbel_ref, khot_ref, *, k, tau, approx_recip):
    s = scores_ref[...].astype(jnp.float32) + gumbel_ref[...].astype(jnp.float32)

    if tau == 1.0:
        # exp(s_t) = exp(s_0) * prod_i max(1 - p_i, EPS): keep the stabilized
        # exponentials live and update multiplicatively — no exp/log inside the
        # k loop (EUP is the saturating unit for this kernel).
        m0 = jnp.max(s, axis=-1, keepdims=True)
        e = jnp.exp(s - m0)
        p = _row_softmax_from_exp(e, approx_recip)
        khot = p

        def body(_, carry):
            e_c, p_c, khot_c = carry
            e_c = e_c * jnp.maximum(1.0 - p_c, EPSILON)
            p_c = _row_softmax_from_exp(e_c, approx_recip)
            return (e_c, p_c, khot_c + p_c)

        if k <= 16:
            for _ in range(1, k):
                e, p, khot = body(None, (e, p, khot))
        else:
            e, p, khot = lax.fori_loop(1, k, body, (e, p, khot), unroll=2)
    else:
        # General tau: same update as the PyTorch module (log-mask + softmax).
        inv_tau = float(1.0 / tau)

        def _softmax(z):
            z = z - jnp.max(z, axis=-1, keepdims=True)
            return _row_softmax_from_exp(jnp.exp(z), approx_recip)

        p = _softmax(s * inv_tau)          # iteration 0 peeled (mask == 1)
        khot = p

        def body(_, carry):
            s_c, p_c, khot_c = carry
            s_c = s_c + jnp.log(jnp.maximum(1.0 - p_c, EPSILON))
            p_c = _softmax(s_c * inv_tau)
            return (s_c, p_c, khot_c + p_c)

        if k <= 16:
            for _ in range(1, k):
                s, p, khot = body(None, (s, p, khot))
        else:
            s, p, khot = lax.fori_loop(1, k, body, (s, p, khot), unroll=2)

    khot_ref[...] = khot.astype(khot_ref.dtype)


# ---------------------------------------------------------------------------
# Wrapper
# ---------------------------------------------------------------------------

def _vmem_budgets():
    """(per-array tile byte target, vmem_limit_bytes), conservative by default."""
    try:
        info = pltpu.get_tpu_info()
        cap = getattr(info, "vmem_capacity_bytes", 0) or 0
        if cap >= (100 << 20):            # v5e / v6e: 128 MiB VMEM
            return 4 << 20, 64 << 20
    except Exception:
        pass
    return 2 << 20, 40 << 20              # v7x-safe (64 MiB physical VMEM)


def _pick_block_b(B, N, *, itemsize, target_bytes, min_grid=4):
    """Batch tile: multiple of 8, under the byte budget, aiming for >= min_grid
    grid steps so double-buffering and megacore sharding are effective."""
    if B < 8:
        return B                           # block == full dim is always legal
    cap = max(8, ((target_bytes // (N * itemsize)) // 8) * 8)
    want = -(-B // min_grid)               # cdiv: tile giving ~min_grid steps
    want = ((want + 7) // 8) * 8
    bm = max(8, min(cap, want))
    bm = min(bm, ((B + 7) // 8) * 8)
    return bm


def subset_operator(scores, *, k, tau=1.0, hard=False, gumbel=None, key=None,
                    approx_recip=True):
    """Soft k-subset relaxation of `scores` (B, N) -> (B, N).

    If `gumbel` is None, Gumbel(0,1) noise is sampled host-side from `key`
    (matching the PyTorch module's internal sampling); pass `gumbel` explicitly
    for exact validation against a reference.
    """
    if hard:
        # TODO(synk): hard=True (top-k scatter + straight-through) has no clean
        # Pallas equivalent; only the soft path is implemented.
        raise NotImplementedError("hard=True not implemented in Pallas kernel")

    B, N = scores.shape
    if gumbel is None:
        if key is None:
            key = jax.random.PRNGKey(0)
        gumbel = jax.random.gumbel(key, scores.shape, dtype=jnp.float32)

    target_bytes, vmem_limit = _vmem_budgets()
    itemsize = jnp.dtype(scores.dtype).itemsize
    bm = _pick_block_b(B, N, itemsize=itemsize, target_bytes=target_bytes)
    grid = (-(-B // bm),)                  # cdiv grid; partial last tile is fine

    kernel = functools.partial(_subset_kernel, k=int(k), tau=float(tau),
                               approx_recip=approx_recip)
    out = pl.pallas_call(
        kernel,
        out_shape=jax.ShapeDtypeStruct((B, N), scores.dtype),
        grid_spec=pltpu.PrefetchScalarGridSpec(
            num_scalar_prefetch=0,
            grid=grid,
            in_specs=[pl.BlockSpec((bm, N), lambda i: (i, 0)),
                      pl.BlockSpec((bm, N), lambda i: (i, 0))],
            out_specs=pl.BlockSpec((bm, N), lambda i: (i, 0)),
        ),
        compiler_params=pltpu.CompilerParams(
            dimension_semantics=("parallel",),
            vmem_limit_bytes=vmem_limit,
        ),
    )(scores, gumbel)
    return out


def subset_operator_ref(scores, gumbel, *, k, tau=1.0):
    """Pure-JAX reference matching the PyTorch forward (hard=False)."""
    s = scores + gumbel
    khot = jnp.zeros_like(s)
    onehot_approx = jnp.zeros_like(s)
    for _ in range(k):
        khot_mask = jnp.maximum(1.0 - onehot_approx, EPSILON)
        s = s + jnp.log(khot_mask)
        onehot_approx = jax.nn.softmax(s / tau, axis=1)
        khot = khot + onehot_approx
    return khot


if __name__ == "__main__":
    # Small shapes: batch=8, num categories=128, k=4 subset elements.
    B, N, K, TAU = 8, 128, 4, 1.0

    key = jax.random.PRNGKey(0)
    k_scores, k_gumbel, k_sample = jax.random.split(key, 3)
    scores = jax.random.normal(k_scores, (B, N), dtype=jnp.float32)
    gumbel = jax.random.gumbel(k_gumbel, (B, N), dtype=jnp.float32)

    # 1) Exact-reciprocal path with externally supplied noise (tau == 1 fast path).
    out_exact = jax.block_until_ready(
        subset_operator(scores, k=K, tau=TAU, gumbel=gumbel, approx_recip=False))
    ref = subset_operator_ref(scores, gumbel, k=K, tau=TAU)
    np.testing.assert_allclose(np.asarray(out_exact), np.asarray(ref),
                               rtol=1e-4, atol=1e-5)

    # 2) Default fast path (approx EUP reciprocal): loose check vs reference.
    out_fast = jax.block_until_ready(
        subset_operator(scores, k=K, tau=TAU, gumbel=gumbel))
    np.testing.assert_allclose(np.asarray(out_fast), np.asarray(ref),
                               rtol=2e-2, atol=2e-2)

    # 3) General-tau (log/exp) path, exact reciprocal.
    out_tau = jax.block_until_ready(
        subset_operator(scores, k=K, tau=0.5, gumbel=gumbel, approx_recip=False))
    ref_tau = subset_operator_ref(scores, gumbel, k=K, tau=0.5)
    np.testing.assert_allclose(np.asarray(out_tau), np.asarray(ref_tau),
                               rtol=1e-4, atol=1e-5)

    # 4) Production path: noise sampled internally (as the PyTorch module does).
    out_rng = jax.block_until_ready(
        subset_operator(scores, k=K, tau=TAU, key=k_sample))
    o = np.asarray(out_rng)
    assert o.shape == (B, N)
    # Each row of khot is a sum of K softmaxes -> sums to ~K, entries in [0, K].
    np.testing.assert_allclose(o.sum(axis=1), np.full((B,), float(K)),
                               rtol=0, atol=5e-2)
    assert np.all(o >= -1e-6) and np.all(o <= K + 1e-3)

    print("KERNEL_OK")
</pallas_src>

<mosaic_0001>
module attributes {stable_mosaic.version = 11 : i64} {
  func.func @_subset_kernel(%arg0: i32, %arg1: memref<8x128xf32, #tpu.memory_space<vmem>>, %arg2: memref<8x128xf32, #tpu.memory_space<vmem>>, %arg3: memref<8x128xf32, #tpu.memory_space<vmem>>) attributes {dimension_semantics = [#tpu.dimension_semantics<parallel>], iteration_bounds = array<i64: 1>, scalar_prefetch = 0 : i64, scratch_operands = 0 : i64, tpu.core_type = #tpu.core_type<tc>, window_params = [{transform_indices = @transform_0, window_bounds = array<i64: 8, 128>}, {transform_indices = @transform_1, window_bounds = array<i64: 8, 128>}, {transform_indices = @transform_2, window_bounds = array<i64: 8, 128>}]} {
    %c0 = arith.constant 0 : index
    %c0_0 = arith.constant 0 : index
    %0 = vector.load %arg1[%c0, %c0_0] : memref<8x128xf32, #tpu.memory_space<vmem>>, vector<8x128xf32>
    %c0_1 = arith.constant 0 : index
    %c0_2 = arith.constant 0 : index
    %1 = vector.load %arg2[%c0_1, %c0_2] : memref<8x128xf32, #tpu.memory_space<vmem>>, vector<8x128xf32>
    %2 = arith.addf %0, %1 : vector<8x128xf32>
    %cst = arith.constant dense<0xFF800000> : vector<8xf32>
    %3 = vector.multi_reduction <maximumf>, %2, %cst [1] : vector<8x128xf32> to vector<8xf32>
    %4 = vector.shape_cast %3 : vector<8xf32> to vector<8x1xf32>
    %5 = vector.broadcast %4 : vector<8x1xf32> to vector<8x128xf32>
    %6 = arith.subf %2, %5 : vector<8x128xf32>
    %7 = math.exp %6 : vector<8x128xf32>
    %cst_3 = arith.constant dense<0.000000e+00> : vector<8xf32>
    %8 = vector.multi_reduction <add>, %7, %cst_3 [1] : vector<8x128xf32> to vector<8xf32>
    %9 = vector.shape_cast %8 : vector<8xf32> to vector<8x1xf32>
    %10 = tpu.reciprocal %9 : vector<8x1xf32> -> vector<8x1xf32>
    %11 = vector.broadcast %10 : vector<8x1xf32> to vector<8x128xf32>
    %12 = arith.mulf %7, %11 : vector<8x128xf32>
    %cst_4 = arith.constant 1.000000e+00 : f32
    %13 = vector.broadcast %cst_4 : f32 to vector<8x128xf32>
    %14 = arith.subf %13, %12 : vector<8x128xf32>
    %cst_5 = arith.constant 1.17549435E-38 : f32
    %15 = vector.broadcast %cst_5 : f32 to vector<8x128xf32>
    %16 = arith.maximumf %14, %15 : vector<8x128xf32>
    %17 = arith.mulf %7, %16 : vector<8x128xf32>
    %cst_6 = arith.constant dense<0.000000e+00> : vector<8xf32>
    %18 = vector.multi_reduction <add>, %17, %cst_6 [1] : vector<8x128xf32> to vector<8xf32>
    %19 = vector.shape_cast %18 : vector<8xf32> to vector<8x1xf32>
    %20 = tpu.reciprocal %19 : vector<8x1xf32> -> vector<8x1xf32>
    %21 = vector.broadcast %20 : vector<8x1xf32> to vector<8x128xf32>
    %22 = arith.mulf %17, %21 : vector<8x128xf32>
    %23 = arith.addf %12, %22 : vector<8x128xf32>
    %cst_7 = arith.constant 1.000000e+00 : f32
    %24 = vector.broadcast %cst_7 : f32 to vector<8x128xf32>
    %25 = arith.subf %24, %22 : vector<8x128xf32>
    %cst_8 = arith.constant 1.17549435E-38 : f32
    %26 = vector.broadcast %cst_8 : f32 to vector<8x128xf32>
    %27 = arith.maximumf %25, %26 : vector<8x128xf32>
    %28 = arith.mulf %17, %27 : vector<8x128xf32>
    %cst_9 = arith.constant dense<0.000000e+00> : vector<8xf32>
    %29 = vector.multi_reduction <add>, %28, %cst_9 [1] : vector<8x128xf32> to vector<8xf32>
    %30 = vector.shape_cast %29 : vector<8xf32> to vector<8x1xf32>
    %31 = tpu.reciprocal %30 : vector<8x1xf32> -> vector<8x1xf32>
    %32 = vector.broadcast %31 : vector<8x1xf32> to vector<8x128xf32>
    %33 = arith.mulf %28, %32 : vector<8x128xf32>
    %34 = arith.addf %23, %33 : vector<8x128xf32>
    %cst_10 = arith.constant 1.000000e+00 : f32
    %35 = vector.broadcast %cst_10 : f32 to vector<8x128xf32>
    %36 = arith.subf %35, %33 : vector<8x128xf32>
    %cst_11 = arith.constant 1.17549435E-38 : f32
    %37 = vector.broadcast %cst_11 : f32 to vector<8x128xf32>
    %38 = arith.maximumf %36, %37 : vector<8x128xf32>
    %39 = arith.mulf %28, %38 : vector<8x128xf32>
    %cst_12 = arith.constant dense<0.000000e+00> : vector<8xf32>
    %40 = vector.multi_reduction <add>, %39, %cst_12 [1] : vector<8x128xf32> to vector<8xf32>
    %41 = vector.shape_cast %40 : vector<8xf32> to vector<8x1xf32>
    %42 = tpu.reciprocal %41 : vector<8x1xf32> -> vector<8x1xf32>
    %43 = vector.broadcast %42 : vector<8x1xf32> to vector<8x128xf32>
    %44 = arith.mulf %39, %43 : vector<8x128xf32>
    %45 = arith.addf %34, %44 : vector<8x128xf32>
    %c0_13 = arith.constant 0 : index
    %c0_14 = arith.constant 0 : index
    %46 = vector.load %arg3[%c0_13, %c0_14] : memref<8x128xf32, #tpu.memory_space<vmem>>, vector<8x128xf32>
    tpu.vector_store %arg3[%c0_13, %c0_14], %45 {strides = array<i32>} : memref<8x128xf32, #tpu.memory_space<vmem>>, vector<8x128xf32>,
    return
  }
  func.func @transform_0(%arg0: i32) -> (i32, i32) {
    %c0_i32 = arith.constant 0 : i32
    %c0_i32_0 = arith.constant 0 : i32
    return %arg0, %c0_i32 : i32, i32
  }
  func.func @transform_1(%arg0: i32) -> (i32, i32) {
    %c0_i32 = arith.constant 0 : i32
    %c0_i32_0 = arith.constant 0 : i32
    return %arg0, %c0_i32 : i32, i32
  }
  func.func @transform_2(%arg0: i32) -> (i32, i32) {
    %c0_i32 = arith.constant 0 : i32
    %c0_i32_0 = arith.constant 0 : i32
    return %arg0, %c0_i32 : i32, i32
  }
}

</mosaic_0001>

<bundles_post_ra>
// kernel: tpu_custom_call.1
= control target key start
LH: loop header
LB: loop body
LE: loop exit
PB: predicated region body
PF: predicated region fallthrough
CT: control target
= control target key end

     0   :  { %7 = vsyncpa [#allocation3], 0  ;;  %s195_s0 = inlined_call_operand.hbm [shape: f32[8,128], index: 0, kind: input, shape index: {}]   ;;  %s196_s1 = inlined_call_operand.hbm [shape: f32[8,128], index: 1, kind: input, shape index: {}]   ;;  %s197_s2 = inlined_call_operand.hbm [shape: f32[8,128], index: 2, kind: output, shape index: {}]  }
   0x1   :  { %8 = vsyncpa [#allocation6], 0 }
   0x2   :  { %9 = vsyncpa [#allocation4], 0  ;;  %s168_s9 = smov [#allocation2]   ;;  %s169_s11 = smov [#allocation5]  }
   0x3   :  { %s16_s10 = sshll.u32 %s168_s9, 4  ;;  %s26_s12 = sshll.u32 %s169_s11, 4  ;;  %s17_s10 = int_to_ptr.vmem [resolvable:$true] %s16_s10  ;;  %s27_s12 = int_to_ptr.vmem [resolvable:$true] %s26_s12 }
   0x4   :  { %s110_s13 = scalar_lea.vmem %s17_s10, 128  ;;  %p115_p1 = scmp.lt.s32.totalorder %s17_s10, %s17_s10 }
   0x5   :  { %p111_p0 = scmp.ne.s32.totalorder %s17_s10, %s110_s13  ;;  %p116_p2 = scmp.lt.s32.totalorder %s110_s13, %s110_s13 }
   0x7   :  { %p117_p3 = por %p116_p2, %p115_p1 }
   0x9   :  { %p118_p4 = pnand %p117_p3, %p111_p0 }
   0xb   :  { %121 = shalt.err (!%p118_p4)
}
   0xc   :  { %19 = dma.hbm_to_vmem [thread:$0]  %s195_s0, 128, %s17_s10, [#allocation3]  }
   0xd   :  { %s130_s16 = scalar_lea.vmem %s27_s12, 128  ;;  %p135_p6 = scmp.lt.s32.totalorder %s27_s12, %s27_s12 }
   0xe   :  { %p131_p5 = scmp.ne.s32.totalorder %s27_s12, %s130_s16  ;;  %p136_p7 = scmp.lt.s32.totalorder %s130_s16, %s130_s16 }
  0x10   :  { %p137_p8 = por %p136_p7, %p135_p6 }
  0x12   :  { %p138_p9 = pnand %p137_p8, %p131_p5 }
  0x14   :  { %141 = shalt.err (!%p138_p9)
}
  0x15   :  { %29 = dma.hbm_to_vmem [thread:$0]  %s196_s1, 128, %s27_s12, [#allocation6]  }
  0x16   :  { %162 = dma.done.wait [#allocation3], 128  }
  0x17   :  { %163 = vsyncadd [#allocation3], 4294967168 }
  0x18   :  { %164 = dma.done.wait [#allocation6], 128  }
  0x19   :  { %165 = vsyncadd [#allocation6], 4294967168  ;;  %v36_v0 = vld [vmem:[#allocation2] sm:$0xff]  ;;  %v37_v1 = vld [vmem:[#allocation5] sm:$0xff]  ;;  %s170_s0 = smov [#allocation7]  }
  0x1a   :  { %v38_v2 = vadd.f32 %v37_v1, %v36_v0  ;;  %s79_s1 = sshll.u32 %s170_s0, 4  ;;  %s80_s1 = int_to_ptr.vmem [resolvable:$true] %s79_s1 }
  0x1b   :  { %s142_s19 = scalar_lea.vmem %s80_s1, 128  ;;  %p147_p11 = scmp.lt.s32.totalorder %s80_s1, %s80_s1 }
  0x1c   :  { %39 = vmax.xlane.f32.xlu0 %v38_v2  ;;  %p143_p10 = scmp.ne.s32.totalorder %s80_s1, %s142_s19  ;;  %p148_p12 = scmp.lt.s32.totalorder %s142_s19, %s142_s19 }
  0x1e   :  { %p149_p13 = por %p148_p12, %p147_p11 }
  0x20   :  { %p150_p0 = pnand %p149_p13, %p143_p10 }
  0xa5   :  { %v40_v3 = vpop.xlane.xlu0 %39 }
  0xa6   :  { %v41_v4 = vsub.f32 %v38_v2, %v40_v3 }
  0xa8   :  { %v42_v5 = vmul.f32 1.442695, %v41_v4 }
  0xaa   :  { %92 = vpow2.f32 %v42_v5 }
  0xb7   :  { %v93_v6 = vpop.eup %92 }
  0xb8   :  { %44 = vadd.xlane.f32.xlu0 %v93_v6 }
 0x141   :  { %v45_v7 = vpop.xlane.xlu0 %44 }
 0x142   :  { %94 = vrcp.f32 %v45_v7 }
 0x14f   :  { %v95_v8 = vpop.eup %94 }
 0x150   :  { %v47_v9 = vmul.f32 %v95_v8, %v93_v6 }
 0x152   :  { %v48_v10 = vsub.f32 1.0, %v47_v9 }
 0x154   :  { %v49_v11 = vmax.f32 %v48_v10, 1.1754944e-38 }
 0x156   :  { %v50_v12 = vmul.f32 %v93_v6, %v49_v11 }
 0x158   :  { %51 = vadd.xlane.f32.xlu1 %v50_v12 }
 0x1e1   :  { %v52_v13 = vpop.xlane.xlu1 %51 }
 0x1e2   :  { %96 = vrcp.f32 %v52_v13 }
 0x1ef   :  { %v97_v14 = vpop.eup %96 }
 0x1f0   :  { %v54_v15 = vmul.f32 %v97_v14, %v50_v12 }
 0x1f2   :  { %v56_v16 = vsub.f32 1.0, %v54_v15  ;;  %v55_v22 = vadd.f32 %v54_v15, %v47_v9 }
 0x1f4   :  { %v57_v17 = vmax.f32 %v56_v16, 1.1754944e-38 }
 0x1f6   :  { %v58_v18 = vmul.f32 %v57_v17, %v50_v12 }
 0x1f8   :  { %59 = vadd.xlane.f32.xlu1 %v58_v18 }
 0x281   :  { %v60_v19 = vpop.xlane.xlu1 %59 }
 0x282   :  { %98 = vrcp.f32 %v60_v19 }
 0x28f   :  { %v99_v20 = vpop.eup %98 }
 0x290   :  { %v62_v21 = vmul.f32 %v99_v20, %v58_v18 }
 0x292   :  { %v64_v23 = vsub.f32 1.0, %v62_v21  ;;  %v63_v24 = vadd.f32 %v62_v21, %v55_v22 }
 0x294   :  { %v65_v25 = vmax.f32 %v64_v23, 1.1754944e-38 }
 0x296   :  { %v66_v26 = vmul.f32 %v65_v25, %v58_v18 }
 0x298   :  { %67 = vadd.xlane.f32.xlu0 %v66_v26 }
 0x321   :  { %v68_v27 = vpop.xlane.xlu0 %67 }
 0x322   :  { %100 = vrcp.f32 %v68_v27 }
 0x32f   :  { %v101_v28 = vpop.eup %100 }
 0x330   :  { %v70_v29 = vmul.f32 %v101_v28, %v66_v26 }
 0x332   :  { %v71_v30 = vadd.f32 %v70_v29, %v63_v24 }
 0x334   :  { %72 = vst [vmem:[#allocation7] sm:$0xff] %v71_v30 }
 0x335   :  { %153 = shalt.err (!%p150_p0)
}
 0x336   :  { %82 = dma.vmem_to_hbm [thread:$0]  %s80_s1, 128, %s197_s2, [#allocation4]  }
 0x337   :  { %166 = dma.done.wait [#allocation4], 128  }
 0x338   :  { %167 = vsyncadd [#allocation4], 4294967168 }
 0x339   :  { %86 = vsyncpa [#allocation3], 1 }
 0x33a   :  { %87 = vsyncpa [#allocation6], 1 }
 0x33b   :  { %88 = vsyncpa [#allocation4], 1 }

</bundles_post_ra>
